<compile_context>
chip_gen: v7x
topology: tpu7x:2x2x1
jax: 0.10.0
libtpu: 0.0.40
codegen_flags: <defaults>
</compile_context>

<pallas_src>
import functools

import jax
import jax.numpy as jnp
from jax.experimental import pallas as pl
from jax.experimental.pallas import tpu as pltpu


NEG_SLOPE = 0.01            # torch leaky_relu default
LN_EPS = 1e-5               # LayerNorm eps, added to std (matches the PyTorch module)
VMEM_BLOCK_BUDGET = 40 * 2**20   # double-buffered block budget; fits v7x's 64 MiB VMEM


def _round_up(x, m):
    return ((x + m - 1) // m) * m


def _disc_block_kernel(pt_ref, w_ref, affine_ref, o_ref, *, bt, p_pad, p, n_valid):
    """One grid step handles Bt batch samples with a single fused matmul.

    pt_ref    : (K_pad, Bt*P_pad) bf16  im2col patches, Bt samples side by side on lanes
    w_ref     : (Cout, K_pad)     bf16  flattened conv weight
    affine_ref: (Cout, 3)         f32   columns: [bias, gamma, beta]
    o_ref     : (Bt, Cout, P)     out dtype (already NCHW-ordered per sample)
    """
    bias_c = affine_ref[:, 0:1]                   # (Cout, 1) f32
    gamma_c = affine_ref[:, 1:2]                  # (Cout, 1)
    beta_c = affine_ref[:, 2:3]                   # (Cout, 1)

    # Single MXU matmul for all Bt samples (bf16 in, f32 accumulate).  Bias is NOT added
    # here: the padded lanes of the pre-bias result are exactly zero, which lets the LN
    # statistics be computed without any validity mask (bias is folded in analytically).
    y_all = jnp.dot(w_ref[...], pt_ref[...],
                    preferred_element_type=jnp.float32)     # (Cout, Bt*P_pad)

    # Per-grid-step constants for the bias corrections.
    b_sum = jnp.sum(bias_c, keepdims=True)                  # (1,1)  sum_c b_c
    b_sq_sum = jnp.sum(bias_c * bias_c, keepdims=True)      # (1,1)  sum_c b_c^2
    inv_n = 1.0 / n_valid
    inv_nm1 = 1.0 / max(n_valid - 1.0, 1.0)

    for b in range(bt):   # short static loop: only reductions + VPU work per sample
        y = y_all[:, b * p_pad:(b + 1) * p_pad]              # (Cout, P_pad), 128-aligned
        r_c = jnp.sum(y, axis=1, keepdims=True)              # (Cout, 1) per-channel sums

        # Stats of the *biased* conv output t = y + b_c over the P valid positions:
        #   S1 = sum(y) + P*sum(b_c)
        #   S2 = sum(y^2) + 2*sum(b_c * rowsum(y)) + P*sum(b_c^2)
        s1 = jnp.sum(r_c, keepdims=True) + p * b_sum
        s2 = (jnp.sum(y * y, keepdims=True)
              + 2.0 * jnp.sum(bias_c * r_c, keepdims=True)
              + p * b_sq_sum)

        mean = s1 * inv_n
        var = jnp.maximum((s2 - s1 * mean) * inv_nm1, 0.0)   # unbiased (N-1), like torch.std
        denom = jnp.sqrt(var) + LN_EPS                       # (x - mean) / (std + eps)

        # Folded per-channel affine: out = scale * y + shift.
        scale = gamma_c / denom                              # (Cout, 1)
        shift = (bias_c - mean) * scale + beta_c             # (Cout, 1)
        z = scale * y + shift                                # (Cout, P_pad)

        # leaky_relu(z) = max(z, 0.01*z); store only the P valid spatial lanes.
        act = jnp.maximum(z, NEG_SLOPE * z)
        o_ref[b] = act[:, :p].astype(o_ref.dtype)


@functools.partial(jax.jit, static_argnames=("kernel", "stride", "out_dtype"))
def discriminator_block(x_nchw, weight, bias, gamma, beta, *, kernel, stride,
                        out_dtype=None):
    """x_nchw: (B, Cin, H, W); weight: (Cout, Cin, KH, KW); bias/gamma/beta: (Cout,)."""
    B, Cin, H, W = x_nchw.shape
    Cout = weight.shape[0]
    KH = KW = kernel
    OH = (H - KH) // stride + 1
    OW = (W - KW) // stride + 1
    P = OH * OW
    K = Cin * KH * KW
    out_dtype = jnp.dtype(x_nchw.dtype if out_dtype is None else out_dtype)

    # Padded extents: P on lanes (128-multiple), K on sublanes (16-multiple for bf16).
    P_pad = _round_up(P, 128)
    K_pad = _round_up(K, 16)
    Cout_pad = _round_up(Cout, 8)

    # --- VMEM-budgeted batch blocking --------------------------------------------------
    out_item = out_dtype.itemsize

    def _block_bytes(bt):
        pt = K_pad * bt * P_pad * 2                 # bf16 patch block
        out = bt * Cout_pad * P_pad * out_item      # output block (VMEM-padded)
        w = Cout_pad * K_pad * 2
        aff = Cout_pad * 128 * 4
        return 2 * (pt + out) + 2 * (w + aff)       # double-buffered

    # Keep >= ~4 grid steps when the batch allows (v7x: 2 TCs x >= 2 steps each for
    # DMA/compute overlap); otherwise as large as VMEM allows.  Bt always divides B.
    sched_cap = max(1, B // 4)
    Bt = 1
    for d in range(1, min(B, sched_cap) + 1):
        if B % d == 0 and _block_bytes(d) <= VMEM_BLOCK_BUDGET:
            Bt = d
    G = B // Bt
    BtP = Bt * P_pad

    vmem_need = _block_bytes(Bt)
    vmem_limit = int(min(max(vmem_need * 5 // 4 + (2 << 20), 32 * 2**20), 112 * 2**20))
    # TODO(synk): if a single sample exceeds the budget (huge Cin/P layers), add a P-tile
    # grid axis with two-pass LayerNorm stats instead of relying on a larger VMEM limit.

    # --- glue: im2col built in bf16, directly in the fused (G, K_pad, Bt*P_pad) layout --
    # Flatten order k = ci*KH*KW + kh*KW + kw matches torch's weight.reshape(Cout, K).
    x16 = x_nchw.astype(jnp.bfloat16)
    cols = []
    for kh in range(KH):
        for kw in range(KW):
            win = x16[:, :, kh:kh + OH * stride:stride, kw:kw + OW * stride:stride]
            cols.append(win.reshape(B, Cin, P))                 # (B, Cin, P) bf16
    patches = jnp.stack(cols, axis=2).reshape(B, K, P)          # (B, K, P) bf16
    patches = jnp.pad(patches, ((0, 0), (0, K_pad - K), (0, P_pad - P)))
    # Samples of a block sit side by side along lanes -> one fused matmul per grid step.
    patches = (patches.reshape(G, Bt, K_pad, P_pad)
               .transpose(0, 2, 1, 3)
               .reshape(G, K_pad, BtP))
    # TODO(synk): move im2col into the kernel (DMA the NCHW sample + KH*KW shifted
    # matmuls) to avoid the KH*KW-fold duplication of the input in HBM for large layers.

    w_mat = jnp.pad(weight.reshape(Cout, K).astype(jnp.bfloat16),
                    ((0, 0), (0, K_pad - K)))                   # (Cout, K_pad) bf16
    affine = jnp.stack(
        [bias.astype(jnp.float32), gamma.astype(jnp.float32), beta.astype(jnp.float32)],
        axis=1,
    )                                                           # (Cout, 3) f32

    kern = functools.partial(_disc_block_kernel, bt=Bt, p_pad=P_pad, p=P,
                             n_valid=float(Cout * P))

    out = pl.pallas_call(
        kern,
        out_shape=jax.ShapeDtypeStruct((B, Cout, P), out_dtype),
        grid_spec=pltpu.PrefetchScalarGridSpec(
            num_scalar_prefetch=0,
            grid=(G,),
            in_specs=[
                pl.BlockSpec((None, K_pad, BtP), lambda g: (g, 0, 0)),
                pl.BlockSpec((Cout, K_pad), lambda g: (0, 0)),
                pl.BlockSpec((Cout, 3), lambda g: (0, 0)),
            ],
            out_specs=pl.BlockSpec((Bt, Cout, P), lambda g: (g, 0, 0)),
        ),
        compiler_params=pltpu.CompilerParams(
            dimension_semantics=("parallel",),
            vmem_limit_bytes=vmem_limit,
        ),
    )(patches, w_mat, affine)

    # (B, Cout, P) -> (B, Cout, OH, OW) is layout-preserving: no extra HBM copy.
    return out.reshape(B, Cout, OH, OW)


if __name__ == "__main__":
    # Small deterministic setup: in_dim=4, out_dim=8, kernel=3, stride=1, 16x16 input.
    key = jax.random.PRNGKey(0)
    k_x, k_w, k_b, k_g = jax.random.split(key, 4)

    B, Cin, H, W = 2, 4, 16, 16
    Cout, KSZ, STRIDE = 8, 3, 1

    x = jax.random.normal(k_x, (B, Cin, H, W), dtype=jnp.float32)

    # Deterministic "Conv2d"-style params (synthetic, not a checkpoint load).
    fan_in = Cin * KSZ * KSZ
    bound = 1.0 / jnp.sqrt(jnp.float32(fan_in))
    weight = jax.random.uniform(k_w, (Cout, Cin, KSZ, KSZ),
                                minval=-bound, maxval=bound, dtype=jnp.float32)
    bias = jax.random.uniform(k_b, (Cout,), minval=-bound, maxval=bound, dtype=jnp.float32)
    # LayerNorm params: gamma ~ U[0,1), beta = 0 (as in the module's __init__).
    gamma = jax.random.uniform(k_g, (Cout,), minval=0.0, maxval=1.0, dtype=jnp.float32)
    beta = jnp.zeros((Cout,), dtype=jnp.float32)

    out = discriminator_block(x, weight, bias, gamma, beta, kernel=KSZ, stride=STRIDE)
    jax.block_until_ready(out)

    OH = (H - KSZ) // STRIDE + 1
    OW = (W - KSZ) // STRIDE + 1
    assert out.shape == (B, Cout, OH, OW)

    # Pure-JAX reference (f32 conv + per-sample LN with unbiased std + leaky_relu);
    # generous tolerance accounts for the kernel's bf16 MXU inputs.
    conv = jax.lax.conv_general_dilated(
        x, weight, (STRIDE, STRIDE), "VALID",
        dimension_numbers=("NCHW", "OIHW", "NCHW")) + bias[None, :, None, None]
    flat = conv.reshape(B, -1)
    mean = flat.mean(axis=1).reshape(B, 1, 1, 1)
    std = jnp.std(flat, axis=1, ddof=1).reshape(B, 1, 1, 1)
    y = (conv - mean) / (std + LN_EPS)
    y = gamma[None, :, None, None] * y + beta[None, :, None, None]
    ref = jnp.where(y >= 0, y, NEG_SLOPE * y)

    max_err = float(jnp.max(jnp.abs(out - ref)))
    assert max_err < 5e-2, f"max abs error vs reference too large: {max_err}"

    print("KERNEL_OK")
</pallas_src>

<mosaic_0001>
module attributes {stable_mosaic.version = 11 : i64} {
  func.func @_disc_block_kernel(%arg0: i32, %arg1: memref<1x48x256xbf16, #tpu.memory_space<vmem>>, %arg2: memref<8x48xbf16, #tpu.memory_space<vmem>>, %arg3: memref<8x3xf32, #tpu.memory_space<vmem>>, %arg4: memref<1x8x196xf32, #tpu.memory_space<vmem>>) attributes {dimension_semantics = [#tpu.dimension_semantics<parallel>], iteration_bounds = array<i64: 2>, scalar_prefetch = 0 : i64, scratch_operands = 0 : i64, tpu.core_type = #tpu.core_type<tc>, window_params = [{transform_indices = @transform_0, window_bounds = array<i64: 1, 48, 256>}, {pipeline_mode = #tpu.pipeline_mode<synchronous>, transform_indices = @transform_1, window_bounds = array<i64: 8, 48>}, {pipeline_mode = #tpu.pipeline_mode<synchronous>, transform_indices = @transform_2, window_bounds = array<i64: 8, 3>}, {transform_indices = @transform_3, window_bounds = array<i64: 1, 8, 196>}]} {
    %c0 = arith.constant 0 : index
    %c0_0 = arith.constant 0 : index
    %0 = vector.load %arg3[%c0, %c0_0] : memref<8x3xf32, #tpu.memory_space<vmem>>, vector<8x1xf32>
    %c0_1 = arith.constant 0 : index
    %c1 = arith.constant 1 : index
    %1 = vector.load %arg3[%c0_1, %c1] : memref<8x3xf32, #tpu.memory_space<vmem>>, vector<8x1xf32>
    %c0_2 = arith.constant 0 : index
    %c2 = arith.constant 2 : index
    %2 = vector.load %arg3[%c0_2, %c2] : memref<8x3xf32, #tpu.memory_space<vmem>>, vector<8x1xf32>
    %c0_3 = arith.constant 0 : index
    %c0_4 = arith.constant 0 : index
    %3 = vector.load %arg2[%c0_3, %c0_4] : memref<8x48xbf16, #tpu.memory_space<vmem>>, vector<8x48xbf16>
    %c0_5 = arith.constant 0 : index
    %c0_6 = arith.constant 0 : index
    %c0_7 = arith.constant 0 : index
    %4 = vector.load %arg1[%c0_5, %c0_6, %c0_7] : memref<1x48x256xbf16, #tpu.memory_space<vmem>>, vector<1x48x256xbf16>
    %5 = vector.shape_cast %4 : vector<1x48x256xbf16> to vector<48x256xbf16>
    %cst = arith.constant dense<0.000000e+00> : vector<8x256xf32>
    %6 = tpu.matmul %3, %5, %cst {dimension_numbers = #tpu.dot_dimension_numbers<[1], [0], [0], [1], [0, 0, 1, 1], [], []>} : vector<8x48xbf16>, vector<48x256xbf16>, vector<8x256xf32> -> vector<8x256xf32>
    %7 = vector.shape_cast %0 : vector<8x1xf32> to vector<1x8x1xf32>
    %cst_8 = arith.constant dense<0.000000e+00> : vector<1xf32>
    %8 = vector.multi_reduction <add>, %7, %cst_8 [1, 2] : vector<1x8x1xf32> to vector<1xf32>
    %9 = vector.shape_cast %8 : vector<1xf32> to vector<1x1x1xf32>
    %10 = vector.extract %9[0, 0, 0] : f32 from vector<1x1x1xf32>
    %11 = vector.broadcast %10 : f32 to vector<1x1xf32>
    %12 = arith.mulf %0, %0 : vector<8x1xf32>
    %13 = vector.shape_cast %12 : vector<8x1xf32> to vector<1x8x1xf32>
    %cst_9 = arith.constant dense<0.000000e+00> : vector<1xf32>
    %14 = vector.multi_reduction <add>, %13, %cst_9 [1, 2] : vector<1x8x1xf32> to vector<1xf32>
    %15 = vector.shape_cast %14 : vector<1xf32> to vector<1x1x1xf32>
    %16 = vector.extract %15[0, 0, 0] : f32 from vector<1x1x1xf32>
    %17 = vector.broadcast %16 : f32 to vector<1x1xf32>
    %cst_10 = arith.constant dense<0.000000e+00> : vector<8xf32>
    %18 = vector.multi_reduction <add>, %6, %cst_10 [1] : vector<8x256xf32> to vector<8xf32>
    %19 = vector.shape_cast %18 : vector<8xf32> to vector<8x1xf32>
    %20 = vector.shape_cast %19 : vector<8x1xf32> to vector<1x8x1xf32>
    %cst_11 = arith.constant dense<0.000000e+00> : vector<1xf32>
    %21 = vector.multi_reduction <add>, %20, %cst_11 [1, 2] : vector<1x8x1xf32> to vector<1xf32>
    %22 = vector.shape_cast %21 : vector<1xf32> to vector<1x1x1xf32>
    %23 = vector.extract %22[0, 0, 0] : f32 from vector<1x1x1xf32>
    %24 = vector.broadcast %23 : f32 to vector<1x1xf32>
    %cst_12 = arith.constant 1.960000e+02 : f32
    %25 = vector.broadcast %cst_12 : f32 to vector<1x1xf32>
    %26 = arith.mulf %25, %11 : vector<1x1xf32>
    %27 = arith.addf %24, %26 : vector<1x1xf32>
    %28 = arith.mulf %6, %6 : vector<8x256xf32>
    %29 = vector.shape_cast %28 : vector<8x256xf32> to vector<1x8x256xf32>
    %cst_13 = arith.constant dense<0.000000e+00> : vector<1xf32>
    %30 = vector.multi_reduction <add>, %29, %cst_13 [1, 2] : vector<1x8x256xf32> to vector<1xf32>
    %31 = vector.shape_cast %30 : vector<1xf32> to vector<1x1x1xf32>
    %32 = vector.extract %31[0, 0, 0] : f32 from vector<1x1x1xf32>
    %33 = vector.broadcast %32 : f32 to vector<1x1xf32>
    %34 = arith.mulf %0, %19 : vector<8x1xf32>
    %35 = vector.shape_cast %34 : vector<8x1xf32> to vector<1x8x1xf32>
    %cst_14 = arith.constant dense<0.000000e+00> : vector<1xf32>
    %36 = vector.multi_reduction <add>, %35, %cst_14 [1, 2] : vector<1x8x1xf32> to vector<1xf32>
    %37 = vector.shape_cast %36 : vector<1xf32> to vector<1x1x1xf32>
    %38 = vector.extract %37[0, 0, 0] : f32 from vector<1x1x1xf32>
    %39 = vector.broadcast %38 : f32 to vector<1x1xf32>
    %cst_15 = arith.constant 2.000000e+00 : f32
    %40 = vector.broadcast %cst_15 : f32 to vector<1x1xf32>
    %41 = arith.mulf %40, %39 : vector<1x1xf32>
    %42 = arith.addf %33, %41 : vector<1x1xf32>
    %cst_16 = arith.constant 1.960000e+02 : f32
    %43 = vector.broadcast %cst_16 : f32 to vector<1x1xf32>
    %44 = arith.mulf %43, %17 : vector<1x1xf32>
    %45 = arith.addf %42, %44 : vector<1x1xf32>
    %cst_17 = arith.constant 6.37755089E-4 : f32
    %46 = vector.broadcast %cst_17 : f32 to vector<1x1xf32>
    %47 = arith.mulf %27, %46 : vector<1x1xf32>
    %48 = arith.mulf %27, %47 : vector<1x1xf32>
    %49 = arith.subf %45, %48 : vector<1x1xf32>
    %cst_18 = arith.constant 6.38162077E-4 : f32
    %50 = vector.broadcast %cst_18 : f32 to vector<1x1xf32>
    %51 = arith.mulf %49, %50 : vector<1x1xf32>
    %cst_19 = arith.constant 0.000000e+00 : f32
    %52 = vector.broadcast %cst_19 : f32 to vector<1x1xf32>
    %53 = arith.maximumf %51, %52 : vector<1x1xf32>
    %54 = math.sqrt %53 : vector<1x1xf32>
    %cst_20 = arith.constant 9.99999974E-6 : f32
    %55 = vector.broadcast %cst_20 : f32 to vector<1x1xf32>
    %56 = arith.addf %54, %55 : vector<1x1xf32>
    %57 = vector.broadcast %56 : vector<1x1xf32> to vector<8x1xf32>
    %58 = arith.divf %1, %57 : vector<8x1xf32>
    %59 = vector.broadcast %47 : vector<1x1xf32> to vector<8x1xf32>
    %60 = arith.subf %0, %59 : vector<8x1xf32>
    %61 = arith.mulf %60, %58 : vector<8x1xf32>
    %62 = arith.addf %61, %2 : vector<8x1xf32>
    %63 = vector.broadcast %58 : vector<8x1xf32> to vector<8x256xf32>
    %64 = arith.mulf %63, %6 : vector<8x256xf32>
    %65 = vector.broadcast %62 : vector<8x1xf32> to vector<8x256xf32>
    %66 = arith.addf %64, %65 : vector<8x256xf32>
    %cst_21 = arith.constant 0.00999999977 : f32
    %67 = vector.broadcast %cst_21 : f32 to vector<8x256xf32>
    %68 = arith.mulf %67, %66 : vector<8x256xf32>
    %69 = arith.maximumf %66, %68 : vector<8x256xf32>
    %70 = vector.extract_strided_slice %69 {offsets = [0, 0], sizes = [8, 196], strides = [1, 1]} : vector<8x256xf32> to vector<8x196xf32>
    %c0_22 = arith.constant 0 : index
    %c0_23 = arith.constant 0 : index
    %c0_24 = arith.constant 0 : index
    %71 = vector.load %arg4[%c0_22, %c0_23, %c0_24] : memref<1x8x196xf32, #tpu.memory_space<vmem>>, vector<1x8x196xf32>
    %72 = vector.shape_cast %71 : vector<1x8x196xf32> to vector<8x196xf32>
    %73 = vector.shape_cast %70 : vector<8x196xf32> to vector<1x8x196xf32>
    tpu.vector_store %arg4[%c0_22, %c0_23, %c0_24], %73 {strides = array<i32>} : memref<1x8x196xf32, #tpu.memory_space<vmem>>, vector<1x8x196xf32>,
    return
  }
  func.func @transform_0(%arg0: i32) -> (i32, i32, i32) {
    %c0_i32 = arith.constant 0 : i32
    %c0_i32_0 = arith.constant 0 : i32
    %c0_i32_1 = arith.constant 0 : i32
    return %arg0, %c0_i32, %c0_i32_0 : i32, i32, i32
  }
  func.func @transform_1(%arg0: i32) -> (i32, i32) {
    %c0_i32 = arith.constant 0 : i32
    %c0_i32_0 = arith.constant 0 : i32
    %c0_i32_1 = arith.constant 0 : i32
    return %c0_i32, %c0_i32_0 : i32, i32
  }
  func.func @transform_2(%arg0: i32) -> (i32, i32) {
    %c0_i32 = arith.constant 0 : i32
    %c0_i32_0 = arith.constant 0 : i32
    %c0_i32_1 = arith.constant 0 : i32
    return %c0_i32, %c0_i32_0 : i32, i32
  }
  func.func @transform_3(%arg0: i32) -> (i32, i32, i32) {
    %c0_i32 = arith.constant 0 : i32
    %c0_i32_0 = arith.constant 0 : i32
    %c0_i32_1 = arith.constant 0 : i32
    return %arg0, %c0_i32, %c0_i32_0 : i32, i32, i32
  }
}

</mosaic_0001>

<bundles_post_ra>
// kernel: discriminator_block.1
= control target key start
LH: loop header
LB: loop body
LE: loop exit
PB: predicated region body
PF: predicated region fallthrough
CT: control target
= control target key end

     0   :  { %s514_s12 = smov 0   ;;  %s569_s0 = inlined_call_operand.vmem [shape: bf16[2,48,256], index: 0, kind: input, shape index: {}]   ;;  %s570_s1 = inlined_call_operand.vmem [shape: bf16[8,48], index: 1, kind: input, shape index: {}]   ;;  %s571_s2 = inlined_call_operand.vmem [shape: f32[8,3], index: 2, kind: input, shape index: {}]   ;;  %s572_s3 = inlined_call_operand.vmem [shape: f32[2,8,196], index: 3, kind: output, shape index: {}]  }
   0x1 LB: > { %s425_s13 = sadd.s32 4294967295, %s488_s12   ;;  %p429_p0 = scmp.ge.s32.totalorder %s488_s12, 1  ;;  %s488_s12 = sphi %s514_s12, %s13_s12  }
   0x2   : > { %p137_p1 = scmp.lt.s32.totalorder %s488_s12, 3 }
   0x4   : > { %p138_p2 = pnand %p429_p0, %p137_p1 }
   0x5   : > { %p161_p3 = scmp.lt.s32.totalorder (!%p138_p2), %s425_s13, 1  ;;  %v490_v0 = vmov (!%p138_p2), 0   ;;  %v173_v7 = vld [vmem:[%s570_s1] sm:$0xf] (!%p138_p2)  ;;  %vm210_vm0 = vcmask (!%p138_p2), 392192   ;;  %vm255_vm1 = vcmask (!%p138_p2), 7168  }
   0x6   : > { %141 = sbr.rel (%p138_p2) target bundleno = 893 (0x37d), region = 32  ;;  %246 = vmatprep.mubr.bf16.mxu0 (!%p138_p2), %v490_v0  ;;  %468 = vset.pattern.permute.xlu0 (!%p138_p2), %v490_v0  ;;  %v536_v8 = vld [vmem:[%s571_s2] sm:$0xff] (!%p138_p2)  ;;  %s491_s22 = smov (!%p138_p2), 126   ;;  %v492_v38 = vmov (!%p138_p2), 1   ;;  %vm368_vm4 = vcmask (!%p138_p2), 556032  }
   0x7   : > { %v267_v9 = vmul.f32 (!%p138_p2), %v536_v8, %v536_v8  ;;  %v256_v19 = vsel (!%p138_p2), %vm255_vm1, %v536_v8, 0.0  ;;  %466 = vset.pattern.permute.xlu1 (!%p138_p2), %v492_v38  ;;  %s493_s28 = smov (!%p138_p2), 127  }
   0x9   : > { %v268_v10 = vsel (!%p138_p2), %vm255_vm1, %v267_v9, 0.0 }
   0xa   : > { %269 = vadd.xlane.f32.xlu1 (!%p138_p2), %v268_v10 }
   0xd   : > { %s574_s13 = smov (!%p161_p3, %s425_s13), 1 }
   0xe   : > { %s443_s14 = smul.u32 48, %s574_s13  ;;  %s442_s29 = sshll.u32 %s574_s13, 4 }
   0xf   : > { %s170_s5 = scalar_lea.vmem %s572_s3, %s442_s29 }
  0x10   : > { %s165_s17 = scalar_lea.vmem %s569_s0, %s443_s14 }
  0x11   : > { %v469_v1 = vld [vmem:[%s165_s17 + $0x4] ss:$8 sps:$4 sm:$0xff]   ;;  %v471_v2 = vld [vmem:[%s165_s17] ss:$8 sps:$4 sm:$0xff]   ;;  %v472_v3 = vld [vmem:[%s165_s17 + $0x14] ss:$8 sps:$4 sm:$0xff]  }
  0x12   : > { %214 = vmatprep.subr.bf16.mxu0 %v469_v1  ;;  %v474_v4 = vld [vmem:[%s165_s17 + $0x10] ss:$8 sps:$4 sm:$0xff]   ;;  %v475_v5 = vld [vmem:[%s165_s17 + $0x24] ss:$8 sps:$4 sm:$0xff]   ;;  %v477_v6 = vld [vmem:[%s165_s17 + $0x20] ss:$8 sps:$4 sm:$0xff]  }
  0x13   : > { %215 = vmatpush1.bf16.msra.mxu0 %v471_v2 }
  0x14   : > { %216 = vmatprep.subr.bf16.mxu0 %v472_v3 }
  0x17   : > { %217 = vmatpush1.bf16.msra.mxu0 %v474_v4 }
  0x18   : > { %218 = vmatprep.subr.bf16.mxu0 %v475_v5 }
  0x1b   : > { %219 = vmatpush1.bf16.msra.mxu0 %v477_v6 }
  0x1e   : > { %439 = vmatmul.mubr.msk.bf16.vlgmr.msra.gmra.mrb[0].mxu0 %vm210_vm0, %v173_v7 }
  0x97   : > { %v270_v20 = vpop.xlane.xlu1 %269 }
  0x98   : > { %v271_v22 = vrot.slane %v270_v20, 4 }
  0x9a   : > { %v272_v26 = vadd.f32 %v271_v22, %v270_v20 }
  0x9c   : > { %v273_v30 = vrot.slane %v272_v26, 2 }
  0x9e   : > { %v274_v33 = vadd.f32 %v273_v30, %v272_v26 }
  0xa0   : > { %v275_v35 = vrot.slane %v274_v33, 1 }
  0xa2   : > { %v276_v37 = vadd.f32 %v275_v35, %v274_v33 }
  0xf1   : > { %v541_v11 = vpop.f32.mrb[0].mxu0 }
  0xf2   : > { %v543_v12 = vpop.f32.mrb[1].mxu0  ;;  %v295_v13 = vmul.f32 %v541_v11, %v541_v11 }
  0xf3   : > { %v252_v14 = vpop.f32.mrb[2].mxu0  ;;  %v279_v15 = vadd.f32 %v543_v12, %v541_v11  ;;  %v296_v16 = vmul.f32 %v543_v12, %v543_v12 }
  0xf4   : > { %v253_v17 = vpop.f32.mrb[3].mxu0 }
  0xf5   : > { %280 = vadd.xlane.f32.xlu0 %v279_v15  ;;  %v297_v18 = vadd.f32 %v296_v16, %v295_v13 }
  0xf9   : > { %257 = vadd.xlane.f32.xlu0 %v256_v19 }
  0xfd   : > { %298 = vadd.xlane.f32.xlu0 %v297_v18 }
 0x182   : > { %v281_v21 = vpop.xlane.xlu0 %280 }
 0x183   : > { %v308_v23 = vmul.f32 %v281_v21, %v536_v8  ;;  %v282_v24 = vsel %vm255_vm1, %v281_v21, 0.0 }
 0x184   : > { %283 = vadd.xlane.f32.xlu1 %v282_v24 }
 0x185   : > { %v309_v28 = vsel %vm255_vm1, %v308_v23, 0.0 }
 0x186   : > { %v258_v25 = vpop.xlane.xlu0 %257 }
 0x187   : > { %v259_v27 = vrot.slane %v258_v25, 4 }
 0x188   : > { %310 = vadd.xlane.f32.xlu1 %v309_v28 }
 0x189   : > { %v260_v29 = vadd.f32 %v259_v27, %v258_v25 }
 0x18a   : > { %v299_v39 = vpop.xlane.xlu0 %298 }
 0x18b   : > { %v261_v31 = vrot.slane %v260_v29, 2  ;;  %v300_v40 = vrot.slane %v299_v39, 4 }
 0x18d   : > { %v262_v32 = vadd.f32 %v261_v31, %v260_v29  ;;  %v301_v41 = vadd.f32 %v300_v40, %v299_v39 }
 0x18f   : > { %v263_v34 = vrot.slane %v262_v32, 1  ;;  %v302_v42 = vrot.slane %v301_v41, 2 }
 0x191   : > { %v264_v36 = vadd.f32 %v263_v34, %v262_v32  ;;  %v303_v47 = vadd.f32 %v302_v42, %v301_v41 }
 0x193   : > { %444 = vpush %v264_v36  ;;  %v304_v52 = vrot.slane %v303_v47, 1 }
 0x194   : > { %446 = vpush %v276_v37 }
 0x195   : > { %v305_v57 = vadd.f32 %v304_v52, %v303_v47 }
 0x199   : > { %346 = vrot.lane.b32.xlu1 %v536_v8, %s491_s22 }
 0x1c4   : > { %s445_s23 = spop %444 }
 0x1c5   : > { %v266_v60 = vstv %s445_s23  ;;  %s447_s24 = spop %446 }
 0x1c6   : > { %v293_v61 = vmul.f32 196.0, %v266_v60  ;;  %v278_v1 = vstv %s447_s24 }
 0x1c7   : > { %v322_v6 = vmul.f32 196.0, %v278_v1 }
 0x211   : > { %v284_v43 = vpop.xlane.xlu1 %283 }
 0x212   : > { %v285_v44 = vrot.slane %v284_v43, 4 }
 0x214   : > { %v286_v45 = vadd.f32 %v285_v44, %v284_v43 }
 0x215   : > { %v311_v46 = vpop.xlane.xlu1 %310 }
 0x216   : > { %v287_v48 = vrot.slane %v286_v45, 2  ;;  %v312_v49 = vrot.slane %v311_v46, 4 }
 0x218   : > { %v313_v50 = vadd.f32 %v312_v49, %v311_v46  ;;  %v288_v51 = vadd.f32 %v287_v48, %v286_v45 }
 0x219   : > { %v347_v26 = vpop.permute.xlu1 %346 }
 0x21a   : > { %v314_v53 = vrot.slane %v313_v50, 2  ;;  %v289_v54 = vrot.slane %v288_v51, 1 }
 0x21c   : > { %v290_v55 = vadd.f32 %v289_v54, %v288_v51  ;;  %v315_v56 = vadd.f32 %v314_v53, %v313_v50 }
 0x21e   : > { %448 = vpush %v290_v55  ;;  %v316_v58 = vrot.slane %v315_v56, 1 }
 0x21f   : > { %450 = vpush %v305_v57 }
 0x220   : > { %v317_v59 = vadd.f32 %v316_v58, %v315_v56 }
 0x222   : > { %452 = vpush %v317_v59 }
 0x24f   : > { %s449_s25 = spop %448 }
 0x250   : > { %v292_v62 = vstv %s449_s25  ;;  %s451_s26 = spop %450 }
 0x251   : > { %v294_v63 = vadd.f32 %v293_v61, %v292_v62  ;;  %v307_v5 = vstv %s451_s26 }
 0x253   : > { %s453_s27 = spop %452  ;;  %v324_v3 = vmul.f32 0.0006377551, %v294_v63 }
 0x254   : > { %v319_v2 = vstv %s453_s27 }
 0x255   : > { %v320_v4 = vmul.f32 2.0, %v319_v2  ;;  %v325_v9 = vmul.f32 %v324_v3, %v294_v63  ;;  %v339_v24 = vsub.f32 %v536_v8, %v324_v3 }
 0x257   : > { %v321_v7 = vadd.f32 %v320_v4, %v307_v5 }
 0x259   : > { %v323_v10 = vadd.f32 %v322_v6, %v321_v7 }
 0x25b   : > { %v326_v13 = vsub.f32 %v323_v10, %v325_v9 }
 0x25d   : > { %v327_v14 = vmul.f32 0.0006381621, %v326_v13 }
 0x25f   : > { %v328_v15 = vmax.f32 %v327_v14, 0.0 }
 0x261   : > { %478 = vrsqrt.f32 %v328_v15  ;;  %vm331_vm2 = vcmp.eq.f32.partialorder %v328_v15, inf  ;;  %v334_v18 = vand.u32 2147483648, %v328_v15  ;;  %vm333_vm3 = vcmp.eq.f32.partialorder %v328_v15, 0.0 }
 0x26b   : > { %v479_v16 = vpop.eup %478 }
 0x26c   : > { %v330_v17 = vmul.f32 %v479_v16, %v328_v15 }
 0x26e   : > { %v332_v19 = vsel %vm331_vm2, %v328_v15, %v330_v17 }
 0x26f   : > { %v335_v20 = vsel %vm333_vm3, %v334_v18, %v332_v19 }
 0x270   : > { %v336_v21 = vadd.f32 1e-05, %v335_v20 }
 0x272   : > { %480 = vrcp.f32 %v336_v21 }
 0x27c   : > { %v481_v22 = vpop.eup %480 }
 0x27d   : > { %v338_v23 = vmul.f32 %v481_v22, %v536_v8 }
 0x27f   : > { %351 = vperm.xlu1 %466, %v338_v23   ;;  %341 = vrot.lane.b32.xlu0 %v338_v23, %s493_s28 }
 0x283   : > { %467 = vset.pattern.permute.xlu1 %v490_v0 }
 0x2f1   : > { %v342_v25 = vpop.permute.xlu0 %341 }
 0x2f2   : > { %v344_v27 = vmul.f32 %v342_v25, %v339_v24 }
 0x2f4   : > { %v349_v28 = vadd.f32 %v347_v26, %v344_v27 }
 0x2f6   : > { %358 = vperm.xlu1 %467, %v349_v28  }
 0x2fe   : > { %v352_v29 = vpop.permute.xlu1 %351 }
 0x2ff   : > { %v354_v30 = vmul.f32 %v352_v29, %v541_v11  ;;  %v355_v31 = vmul.f32 %v352_v29, %v543_v12 }
 0x375   : > { %v359_v32 = vpop.permute.xlu1 %358 }
 0x376   : > { %v361_v33 = vadd.f32 %v359_v32, %v354_v30  ;;  %v362_v34 = vadd.f32 %v359_v32, %v355_v31 }
 0x378   : > { %v363_v35 = vmul.f32 0.01, %v361_v33  ;;  %v364_v36 = vmul.f32 0.01, %v362_v34 }
 0x37a   : > { %v365_v0 = vmax.f32 %v361_v33, %v363_v35  ;;  %v366_v8 = vmax.f32 %v362_v34, %v364_v36 }
 0x37c   : > { %367 = vst [vmem:[%s170_s5] sm:$0xff] %v365_v0  ;;  %369 = vst.msk [vmem:[%s170_s5 + $0x8] sm:$0xff] %vm368_vm4, %v366_v8 }
 0x37d PF: > { %s13_s12 = sadd.s32 1, %s488_s12  }
 0x37e   : > { %p10_p4 = scmp.ge.s32.totalorder %s13_s12, 4  }
 0x380   :  { %12 = sbr.rel (!%p10_p4) target bundleno = 1 (0x1), region = 62 }

</bundles_post_ra>
